<compile_context>
chip_gen: v7x
topology: tpu7x:2x2x1
jax: 0.10.0
libtpu: 0.0.40
codegen_flags: <defaults>
</compile_context>

<pallas_src>
import functools

import jax
import jax.numpy as jnp
from jax import lax
from jax.experimental import pallas as pl
from jax.experimental.pallas import tpu as pltpu


def _cosine_loss_kernel(x1_ref, x2_ref, t_ref, out_ref, acc_ref,
                        *, margin, eps, n_total, tm, inner_steps, need_mask):
    c = pl.program_id(0)   # megacore split ("parallel")
    i = pl.program_id(1)   # row-tile loop ("arbitrary", reduction)

    @pl.when(i == 0)
    def _():
        acc_ref[...] = jnp.zeros_like(acc_ref)

    x1 = x1_ref[...]                       # (tm, D)
    x2 = x2_ref[...]                       # (tm, D)
    if x1.dtype != jnp.float32:
        x1 = x1.astype(jnp.float32)
    if x2.dtype != jnp.float32:
        x2 = x2.astype(jnp.float32)
    t = t_ref[...].astype(jnp.float32)     # (tm, 1)

    dot = jnp.sum(x1 * x2, axis=-1, keepdims=True)      # (tm, 1)
    n1sq = jnp.sum(x1 * x1, axis=-1, keepdims=True)     # (tm, 1)
    n2sq = jnp.sum(x2 * x2, axis=-1, keepdims=True)     # (tm, 1)
    # sqrt(a)*sqrt(b) == sqrt(a*b): one EUP sqrt instead of two.
    sim = dot / (jnp.sqrt(n1sq * n2sq) + eps)            # (tm, 1)

    loss = jnp.where(
        t == 1.0,
        1.0 - sim,
        jnp.maximum(jnp.zeros_like(sim), sim - margin),
    )

    if need_mask:
        # Mask tail rows / fully out-of-range blocks (core 1 may get a clamped,
        # repeated block when the number of tiles is odd): use the *logical*
        # global row index, which exceeds n_total only for invalid rows.
        block_idx = c * inner_steps + i
        row = lax.broadcasted_iota(jnp.int32, (tm, 1), 0)
        global_row = block_idx * tm + row
        loss = jnp.where(global_row < n_total, loss, 0.0)

    acc_ref[...] = acc_ref[...] + loss     # vector accumulate, no per-step reduce

    @pl.when(i == pl.num_programs(1) - 1)
    def _():
        out_ref[...] = (jnp.sum(acc_ref[...], keepdims=True)
                        * jnp.float32(1.0 / n_total))


def cosine_embedding_loss(x1, x2, target, *, margin=0.0, eps=1e-12,
                          tm=None, vmem_limit_bytes=32 * 1024 * 1024):
    """x1, x2: (N, D); target: (N,).  Returns scalar f32 loss."""
    n, d = x1.shape
    assert x2.shape == (n, d)
    assert target.shape == (n,)

    # --- choose the row tile -------------------------------------------------
    if tm is None:
        # ~2 MiB per input block; the pipeline double-buffers 2 inputs
        # (~8 MiB) plus block-sized f32 temporaries -> comfortably inside the
        # VMEM limit on every generation (v5e/v6e 128 MiB, v7x 64 MiB physical).
        bytes_per_row = d * jnp.dtype(x1.dtype).itemsize
        tm = (2 * 1024 * 1024) // max(bytes_per_row, 1)
        tm = min(2048, tm)
    tm = max(8, (tm // 8) * 8)             # multiple of 8 (sublane tiling rule)
    n_ceil = ((n + 7) // 8) * 8
    tm = min(tm, n_ceil)                   # never taller than the problem

    steps_total = pl.cdiv(n, tm)           # number of row tiles overall
    n_split = min(2, steps_total)          # use both TCs on v7x when possible
    inner_steps = pl.cdiv(steps_total, n_split)
    last_block = steps_total - 1
    # Masking is only needed when there is a ragged tail or a repeated block.
    need_mask = (n % tm != 0) or (steps_total % n_split != 0)

    t2d = target.reshape(n, 1).astype(jnp.float32)

    def row_block(c, i):
        # Clamp so we never ask for a block starting past the array end; the
        # kernel-side global-row mask zeroes any such (repeated) block.
        return (jnp.minimum(c * inner_steps + i, last_block), 0)

    kernel = functools.partial(
        _cosine_loss_kernel,
        margin=float(margin), eps=float(eps), n_total=n,
        tm=tm, inner_steps=inner_steps, need_mask=need_mask,
    )

    partial = pl.pallas_call(
        kernel,
        out_shape=jax.ShapeDtypeStruct((n_split, 1), jnp.float32),
        grid_spec=pltpu.PrefetchScalarGridSpec(
            num_scalar_prefetch=0,
            grid=(n_split, inner_steps),
            in_specs=[
                pl.BlockSpec((tm, d), row_block),
                pl.BlockSpec((tm, d), row_block),
                pl.BlockSpec((tm, 1), row_block),
            ],
            out_specs=pl.BlockSpec((1, 1), lambda c, i: (c, 0)),
            scratch_shapes=[pltpu.VMEM((tm, 1), jnp.float32)],
        ),
        compiler_params=pltpu.CompilerParams(
            dimension_semantics=("parallel", "arbitrary"),
            vmem_limit_bytes=vmem_limit_bytes,
        ),
    )(x1, x2, t2d)

    # Each core produced (sum of its rows' loss) / N; summing gives the mean.
    return jnp.sum(partial)


def _reference(x1, x2, target, margin=0.0, eps=1e-12):
    sim = jnp.sum(x1 * x2, axis=-1) / (
        jnp.linalg.norm(x1, axis=-1) * jnp.linalg.norm(x2, axis=-1) + eps
    )
    loss = jnp.where(target == 1, 1.0 - sim,
                     jnp.maximum(jnp.zeros_like(sim), sim - margin))
    return jnp.mean(loss)


if __name__ == "__main__":
    key = jax.random.PRNGKey(0)

    # Case 1: small, divisible shapes (exercises the mask-free fast path).
    k1, k2, k3, k4, k5, k6 = jax.random.split(key, 6)
    N, D = 16, 32
    x1 = jax.random.normal(k1, (N, D), dtype=jnp.float32)
    x2 = jax.random.normal(k2, (N, D), dtype=jnp.float32)
    target = jnp.where(jax.random.bernoulli(k3, 0.5, (N,)), 1.0, -1.0
                       ).astype(jnp.float32)
    out = jax.block_until_ready(cosine_embedding_loss(x1, x2, target, margin=0.0))
    ref = _reference(x1, x2, target, margin=0.0)
    assert jnp.allclose(out, ref, atol=1e-5, rtol=1e-5), (out, ref)

    # Case 2: non-divisible N with a forced small tile — exercises the tail
    # mask, the multi-step accumulator, and the 2-way core split.
    N2, D2 = 300, 96
    y1 = jax.random.normal(k4, (N2, D2), dtype=jnp.float32)
    y2 = jax.random.normal(k5, (N2, D2), dtype=jnp.float32)
    target2 = jnp.where(jax.random.bernoulli(k6, 0.5, (N2,)), 1.0, -1.0
                        ).astype(jnp.float32)
    out2 = jax.block_until_ready(
        cosine_embedding_loss(y1, y2, target2, margin=0.1, tm=64))
    ref2 = _reference(y1, y2, target2, margin=0.1)
    assert jnp.allclose(out2, ref2, atol=1e-5, rtol=1e-5), (out2, ref2)

    print("KERNEL_OK")
</pallas_src>

<mosaic_0001>
module attributes {stable_mosaic.version = 11 : i64} {
  func.func @_cosine_loss_kernel(%arg0: i32, %arg1: i32, %arg2: memref<16x32xf32, #tpu.memory_space<vmem>>, %arg3: memref<16x32xf32, #tpu.memory_space<vmem>>, %arg4: memref<16x1xf32, #tpu.memory_space<vmem>>, %arg5: memref<1x1xf32, #tpu.memory_space<vmem>>, %arg6: memref<16x1xf32, #tpu.memory_space<vmem>>) attributes {dimension_semantics = [#tpu.dimension_semantics<parallel>, #tpu.dimension_semantics<arbitrary>], iteration_bounds = array<i64: 1, 1>, scalar_prefetch = 0 : i64, scratch_operands = 1 : i64, tpu.core_type = #tpu.core_type<tc>, window_params = [{transform_indices = @transform_0, window_bounds = array<i64: 16, 32>}, {transform_indices = @transform_1, window_bounds = array<i64: 16, 32>}, {transform_indices = @transform_2, window_bounds = array<i64: 16, 1>}, {transform_indices = @transform_3, window_bounds = array<i64: 1, 1>}]} {
    %c0_i32 = arith.constant 0 : i32
    %0 = arith.cmpi eq, %arg1, %c0_i32 : i32
    %1 = arith.extui %0 : i1 to i32
    %c0_i32_0 = arith.constant 0 : i32
    %2 = arith.cmpi ne, %1, %c0_i32_0 : i32
    scf.if %2 {
      %cst_19 = arith.constant 0.000000e+00 : f32
      %35 = vector.broadcast %cst_19 : f32 to vector<16x1xf32>
      %c0_20 = arith.constant 0 : index
      %c0_21 = arith.constant 0 : index
      %36 = vector.load %arg6[%c0_20, %c0_21] : memref<16x1xf32, #tpu.memory_space<vmem>>, vector<16x1xf32>
      tpu.vector_store %arg6[%c0_20, %c0_21], %35 {strides = array<i32>} : memref<16x1xf32, #tpu.memory_space<vmem>>, vector<16x1xf32>,
    } else {
    }
    %c0 = arith.constant 0 : index
    %c0_1 = arith.constant 0 : index
    %3 = vector.load %arg2[%c0, %c0_1] : memref<16x32xf32, #tpu.memory_space<vmem>>, vector<16x32xf32>
    %c0_2 = arith.constant 0 : index
    %c0_3 = arith.constant 0 : index
    %4 = vector.load %arg3[%c0_2, %c0_3] : memref<16x32xf32, #tpu.memory_space<vmem>>, vector<16x32xf32>
    %c0_4 = arith.constant 0 : index
    %c0_5 = arith.constant 0 : index
    %5 = vector.load %arg4[%c0_4, %c0_5] : memref<16x1xf32, #tpu.memory_space<vmem>>, vector<16x1xf32>
    %6 = arith.mulf %3, %4 : vector<16x32xf32>
    %cst = arith.constant dense<0.000000e+00> : vector<16xf32>
    %7 = vector.multi_reduction <add>, %6, %cst [1] : vector<16x32xf32> to vector<16xf32>
    %8 = vector.shape_cast %7 : vector<16xf32> to vector<16x1xf32>
    %9 = arith.mulf %3, %3 : vector<16x32xf32>
    %cst_6 = arith.constant dense<0.000000e+00> : vector<16xf32>
    %10 = vector.multi_reduction <add>, %9, %cst_6 [1] : vector<16x32xf32> to vector<16xf32>
    %11 = vector.shape_cast %10 : vector<16xf32> to vector<16x1xf32>
    %12 = arith.mulf %4, %4 : vector<16x32xf32>
    %cst_7 = arith.constant dense<0.000000e+00> : vector<16xf32>
    %13 = vector.multi_reduction <add>, %12, %cst_7 [1] : vector<16x32xf32> to vector<16xf32>
    %14 = vector.shape_cast %13 : vector<16xf32> to vector<16x1xf32>
    %15 = arith.mulf %11, %14 : vector<16x1xf32>
    %16 = math.sqrt %15 : vector<16x1xf32>
    %cst_8 = arith.constant 9.99999996E-13 : f32
    %17 = vector.broadcast %cst_8 : f32 to vector<16x1xf32>
    %18 = arith.addf %16, %17 : vector<16x1xf32>
    %19 = arith.divf %8, %18 : vector<16x1xf32>
    %cst_9 = arith.constant 1.000000e+00 : f32
    %20 = vector.broadcast %cst_9 : f32 to vector<16x1xf32>
    %21 = arith.cmpf oeq, %5, %20 : vector<16x1xf32>
    %cst_10 = arith.constant 1.000000e+00 : f32
    %22 = vector.broadcast %cst_10 : f32 to vector<16x1xf32>
    %23 = arith.subf %22, %19 : vector<16x1xf32>
    %cst_11 = arith.constant 0.000000e+00 : f32
    %24 = vector.broadcast %cst_11 : f32 to vector<16x1xf32>
    %cst_12 = arith.constant 0.000000e+00 : f32
    %25 = vector.broadcast %cst_12 : f32 to vector<16x1xf32>
    %26 = arith.subf %19, %25 : vector<16x1xf32>
    %27 = arith.maximumf %24, %26 : vector<16x1xf32>
    %28 = arith.select %21, %23, %27 : vector<16x1xi1>, vector<16x1xf32>
    %c0_13 = arith.constant 0 : index
    %c0_14 = arith.constant 0 : index
    %29 = vector.load %arg6[%c0_13, %c0_14] : memref<16x1xf32, #tpu.memory_space<vmem>>, vector<16x1xf32>
    %30 = arith.addf %29, %28 : vector<16x1xf32>
    %c0_15 = arith.constant 0 : index
    %c0_16 = arith.constant 0 : index
    %31 = vector.load %arg6[%c0_15, %c0_16] : memref<16x1xf32, #tpu.memory_space<vmem>>, vector<16x1xf32>
    tpu.vector_store %arg6[%c0_15, %c0_16], %30 {strides = array<i32>} : memref<16x1xf32, #tpu.memory_space<vmem>>, vector<16x1xf32>,
    %c0_i32_17 = arith.constant 0 : i32
    %32 = arith.cmpi eq, %arg1, %c0_i32_17 : i32
    %33 = arith.extui %32 : i1 to i32
    %c0_i32_18 = arith.constant 0 : i32
    %34 = arith.cmpi ne, %33, %c0_i32_18 : i32
    scf.if %34 {
      %c0_19 = arith.constant 0 : index
      %c0_20 = arith.constant 0 : index
      %35 = vector.load %arg6[%c0_19, %c0_20] : memref<16x1xf32, #tpu.memory_space<vmem>>, vector<16x1xf32>
      %36 = vector.shape_cast %35 : vector<16x1xf32> to vector<1x16x1xf32>
      %cst_21 = arith.constant dense<0.000000e+00> : vector<1xf32>
      %37 = vector.multi_reduction <add>, %36, %cst_21 [1, 2] : vector<1x16x1xf32> to vector<1xf32>
      %38 = vector.shape_cast %37 : vector<1xf32> to vector<1x1x1xf32>
      %39 = vector.extract %38[0, 0, 0] : f32 from vector<1x1x1xf32>
      %40 = vector.broadcast %39 : f32 to vector<1x1xf32>
      %cst_22 = arith.constant 6.250000e-02 : f32
      %41 = vector.broadcast %cst_22 : f32 to vector<1x1xf32>
      %42 = arith.mulf %40, %41 : vector<1x1xf32>
      %c0_23 = arith.constant 0 : index
      %c0_24 = arith.constant 0 : index
      %43 = vector.load %arg5[%c0_23, %c0_24] : memref<1x1xf32, #tpu.memory_space<vmem>>, vector<1x1xf32>
      tpu.vector_store %arg5[%c0_23, %c0_24], %42 {strides = array<i32>} : memref<1x1xf32, #tpu.memory_space<vmem>>, vector<1x1xf32>,
    } else {
    }
    return
  }
  func.func @transform_0(%arg0: i32, %arg1: i32) -> (i32, i32) {
    %c1_i32 = arith.constant 1 : i32
    %0 = arith.muli %arg0, %c1_i32 : i32
    %1 = arith.addi %0, %arg1 : i32
    %c0_i32 = arith.constant 0 : i32
    %2 = arith.minsi %1, %c0_i32 : i32
    %c0_i32_0 = arith.constant 0 : i32
    %c0_i32_1 = arith.constant 0 : i32
    return %2, %c0_i32_0 : i32, i32
  }
  func.func @transform_1(%arg0: i32, %arg1: i32) -> (i32, i32) {
    %c1_i32 = arith.constant 1 : i32
    %0 = arith.muli %arg0, %c1_i32 : i32
    %1 = arith.addi %0, %arg1 : i32
    %c0_i32 = arith.constant 0 : i32
    %2 = arith.minsi %1, %c0_i32 : i32
    %c0_i32_0 = arith.constant 0 : i32
    %c0_i32_1 = arith.constant 0 : i32
    return %2, %c0_i32_0 : i32, i32
  }
  func.func @transform_2(%arg0: i32, %arg1: i32) -> (i32, i32) {
    %c1_i32 = arith.constant 1 : i32
    %0 = arith.muli %arg0, %c1_i32 : i32
    %1 = arith.addi %0, %arg1 : i32
    %c0_i32 = arith.constant 0 : i32
    %2 = arith.minsi %1, %c0_i32 : i32
    %c0_i32_0 = arith.constant 0 : i32
    %c0_i32_1 = arith.constant 0 : i32
    return %2, %c0_i32_0 : i32, i32
  }
  func.func @transform_3(%arg0: i32, %arg1: i32) -> (i32, i32) {
    %c0_i32 = arith.constant 0 : i32
    %c0_i32_0 = arith.constant 0 : i32
    return %arg0, %c0_i32 : i32, i32
  }
}

</mosaic_0001>

<bundles_post_ra>
// kernel: tpu_custom_call.1
= control target key start
LH: loop header
LB: loop body
LE: loop exit
PB: predicated region body
PF: predicated region fallthrough
CT: control target
= control target key end

     0   :  { %8 = vsyncpa [#allocation4], 0  ;;  %s364_s0 = inlined_call_operand.vmem [shape: f32[16,32], index: 0, kind: input, shape index: {}]   ;;  %s365_s1 = inlined_call_operand.hbm [shape: f32[16,32], index: 1, kind: input, shape index: {}]   ;;  %s366_s2 = inlined_call_operand.vmem [shape: f32[16,1], index: 2, kind: input, shape index: {}]   ;;  %s367_s3 = inlined_call_operand.hbm [shape: f32[1,1], index: 3, kind: output, shape index: {}]  }
   0x1   :  { %9 = vsyncpa [#allocation5], 0  ;;  %s291_s12 = smov [#allocation3]   ;;  %s243_s16 = scalar_lea.hbm %s365_s1, 256 }
   0x2   :  { %s35_s13 = sshll.u32 %s291_s12, 4  ;;  %p244_p0 = scmp.ne.s32.totalorder %s365_s1, %s243_s16  ;;  %s36_s13 = int_to_ptr.vmem [resolvable:$true] %s35_s13 }
   0x3   :  { %p247_p1 = scmp.lt.u32.totalorder %s243_s16, %s365_s1 }
   0x5   :  { %p249_p2 = pnand %p247_p1, %p244_p0 }
   0x7   :  { %252 = shalt.err (!%p249_p2)
}
   0x8   :  { %s253_s21 = scalar_lea.vmem %s36_s13, 256  ;;  %p258_p4 = scmp.lt.s32.totalorder %s36_s13, %s36_s13 }
   0x9   :  { %p254_p3 = scmp.ne.s32.totalorder %s36_s13, %s253_s21  ;;  %p259_p5 = scmp.lt.s32.totalorder %s253_s21, %s253_s21 }
   0xb   :  { %p260_p6 = por %p259_p5, %p258_p4 }
   0xd   :  { %p261_p7 = pnand %p260_p6, %p254_p3 }
   0xf   :  { %264 = shalt.err (!%p261_p7)
}
  0x10   :  { %s292_s22 = smov 128   ;;  %s293_s23 = smov 8  }
  0x11   :  { %41 = dma.hbm_to_vmem [thread:$0]  %s365_s1, 256, %s36_s13, [#allocation4], %s292_s22, %s292_s22, %s293_s23  }
  0x12   :  { %287 = dma.done.wait [#allocation4], 256  }
  0x13   :  { %288 = vsyncadd [#allocation4], 4294967040  ;;  %v112_v0 = vld [vmem:[#allocation3] sm:$0xff]  ;;  %vm118_vm0 = vcmask 261120   ;;  %v110_v1 = vld [vmem:[%s364_s0] sm:$0xff]  ;;  %vm107_vm1 = vcmask 7168  }
  0x14   :  { %v113_v2 = vld [vmem:[#allocation3 + $0x8] sm:$0xff]  ;;  %v133_v3 = vmul.f32 %v112_v0, %v112_v0  ;;  %v125_v4 = vmul.f32 %v110_v1, %v110_v1  ;;  %v111_v6 = vld [vmem:[%s364_s0 + $0x8] sm:$0xff]  ;;  %v116_v12 = vmul.f32 %v112_v0, %v110_v1  ;;  %v294_v16 = vmov 0.0   ;;  %v114_v36 = vld [vmem:[%s366_s2] sm:$0xff] }
  0x15   :  { %v134_v5 = vmul.f32 %v113_v2, %v113_v2  ;;  %v126_v7 = vmul.f32 %v111_v6, %v111_v6  ;;  %v117_v13 = vmul.f32 %v113_v2, %v111_v6  ;;  %108 = vst.msk [vmem:[#allocation2] sm:$0xff] %vm107_vm1, %v294_v16  ;;  %109 = vst.msk [vmem:[#allocation2 + $0x8] sm:$0xff] %vm107_vm1, %v294_v16  ;;  %vm163_vm6 = vcmp.eq.f32.partialorder %v114_v36, 1.0  ;;  %v115_v43 = vld [vmem:[%s366_s2 + $0x8] sm:$0xff]  ;;  %s295_s2 = smov [#allocation6]  }
  0x16   :  { %v135_v8 = vsel %vm118_vm0, %v133_v3, 0.0  ;;  %v127_v9 = vsel %vm118_vm0, %v125_v4, 0.0  ;;  %v119_v14 = vsel %vm118_vm0, %v116_v12, 0.0  ;;  %vm164_vm7 = vcmp.eq.f32.partialorder %v115_v43, 1.0  ;;  %s205_s5 = sshll.u32 %s295_s2, 4  ;;  %s206_s5 = int_to_ptr.vmem [resolvable:$true] %s205_s5 }
  0x17   :  { %136 = vadd.xlane.f32.xlu1 %v135_v8  ;;  %128 = vadd.xlane.f32.xlu0 %v127_v9  ;;  %v138_v10 = vsel %vm118_vm0, %v134_v5, 0.0  ;;  %v130_v11 = vsel %vm118_vm0, %v126_v7, 0.0  ;;  %v122_v15 = vsel %vm118_vm0, %v117_v13, 0.0  ;;  %vm197_vm8 = vcmask 0   ;;  %s265_s7 = scalar_lea.vmem %s206_s5, 16  ;;  %s269_s8 = scalar_lea.vmem %s206_s5, 32 }
  0x18   :  { %p266_p8 = scmp.ne.s32.totalorder %s206_s5, %s265_s7  ;;  %p270_p9 = scmp.lt.s32.totalorder %s206_s5, %s206_s5 }
  0x19   :  { %p271_p10 = scmp.lt.s32.totalorder %s269_s8, %s265_s7 }
  0x1b   :  { %139 = vadd.xlane.f32.xlu1 %v138_v10  ;;  %131 = vadd.xlane.f32.xlu0 %v130_v11  ;;  %p272_p11 = por %p271_p10, %p270_p9 }
  0x1c   :  { %v171_v42 = vld [vmem:[#allocation2] sm:$0xff]  ;;  %v172_v50 = vld [vmem:[#allocation2 + $0x8] sm:$0xff] }
  0x1d   :  { %p273_p12 = pnand %p272_p11, %p266_p8 }
  0x1f   :  { %120 = vadd.xlane.f32.xlu0 %v119_v14  ;;  %123 = vadd.xlane.f32.xlu1 %v122_v15 }
  0xa4   :  { %v137_v17 = vpop.xlane.xlu1 %136  ;;  %v129_v18 = vpop.xlane.xlu0 %128 }
  0xa5   :  { %v141_v19 = vmul.f32 %v137_v17, %v129_v18 }
  0xa7   :  { %235 = vrsqrt.f32 %v141_v19  ;;  %vm145_vm2 = vcmp.eq.f32.partialorder %v141_v19, inf  ;;  %v148_v25 = vand.u32 2147483648, %v141_v19  ;;  %vm147_vm3 = vcmp.eq.f32.partialorder %v141_v19, 0.0 }
  0xa8   :  { %v140_v20 = vpop.xlane.xlu1 %139  ;;  %v132_v21 = vpop.xlane.xlu0 %131 }
  0xa9   :  { %v142_v22 = vmul.f32 %v140_v20, %v132_v21 }
  0xab   :  { %237 = vrsqrt.f32 %v142_v22  ;;  %vm152_vm4 = vcmp.eq.f32.partialorder %v142_v22, inf  ;;  %v155_v31 = vand.u32 2147483648, %v142_v22  ;;  %vm154_vm5 = vcmp.eq.f32.partialorder %v142_v22, 0.0 }
  0xac   :  { %v121_v35 = vpop.xlane.xlu0 %120  ;;  %v124_v39 = vpop.xlane.xlu1 %123 }
  0xb1   :  { %v236_v23 = vpop.eup %235 }
  0xb2   :  { %v144_v24 = vmul.f32 %v236_v23, %v141_v19 }
  0xb4   :  { %v146_v26 = vsel %vm145_vm2, %v141_v19, %v144_v24 }
  0xb5   :  { %v238_v27 = vpop.eup %237  ;;  %v149_v28 = vsel %vm147_vm3, %v148_v25, %v146_v26 }
  0xb6   :  { %v151_v29 = vmul.f32 %v238_v27, %v142_v22  ;;  %v157_v30 = vadd.f32 1e-12, %v149_v28 }
  0xb8   :  { %239 = vrcp.f32 %v157_v30  ;;  %v153_v32 = vsel %vm152_vm4, %v142_v22, %v151_v29 }
  0xb9   :  { %v156_v33 = vsel %vm154_vm5, %v155_v31, %v153_v32 }
  0xba   :  { %v158_v34 = vadd.f32 1e-12, %v156_v33 }
  0xbc   :  { %241 = vrcp.f32 %v158_v34 }
  0xc2   :  { %v240_v37 = vpop.eup %239 }
  0xc3   :  { %v160_v38 = vmul.f32 %v240_v37, %v121_v35 }
  0xc5   :  { %v165_v40 = vsub.f32 1.0, %v160_v38  ;;  %v167_v41 = vmax.f32 %v160_v38, 0.0 }
  0xc6   :  { %v242_v44 = vpop.eup %241 }
  0xc7   :  { %v169_v45 = vsel %vm163_vm6, %v165_v40, %v167_v41  ;;  %v162_v46 = vmul.f32 %v242_v44, %v124_v39 }
  0xc8   :  { %v173_v47 = vadd.f32 %v171_v42, %v169_v45 }
  0xc9   :  { %v166_v48 = vsub.f32 1.0, %v162_v46  ;;  %v168_v49 = vmax.f32 %v162_v46, 0.0 }
  0xca   :  { %176 = vst.msk [vmem:[#allocation2] sm:$0xff] %vm107_vm1, %v173_v47 }
  0xcb   :  { %v170_v51 = vsel %vm164_vm7, %v166_v48, %v168_v49 }
  0xcc   :  { %v174_v52 = vadd.f32 %v172_v50, %v170_v51 }
  0xce   :  { %177 = vst.msk [vmem:[#allocation2 + $0x8] sm:$0xff] %vm107_vm1, %v174_v52 }
  0xd1   :  { %v181_v53 = vld [vmem:[#allocation2] sm:$0xff] }
  0xd2   :  { %v183_v55 = vsel %vm107_vm1, %v181_v53, 0.0 }
  0xd5   :  { %v182_v54 = vld [vmem:[#allocation2 + $0x8] sm:$0xff] }
  0xd6   :  { %v184_v56 = vsel %vm107_vm1, %v182_v54, 0.0 }
  0xd7   :  { %v185_v57 = vadd.f32 %v184_v56, %v183_v55 }
  0xd9   :  { %186 = vadd.xlane.f32.xlu0 %v185_v57 }
 0x166   :  { %v187_v58 = vpop.xlane.xlu0 %186 }
 0x167   :  { %v188_v59 = vrot.slane %v187_v58, 4 }
 0x169   :  { %v189_v60 = vadd.f32 %v188_v59, %v187_v58 }
 0x16b   :  { %v190_v61 = vrot.slane %v189_v60, 2 }
 0x16d   :  { %v191_v62 = vadd.f32 %v190_v61, %v189_v60 }
 0x16f   :  { %v192_v63 = vrot.slane %v191_v62, 1 }
 0x171   :  { %v193_v0 = vadd.f32 %v192_v63, %v191_v62 }
 0x173   :  { %228 = vpush %v193_v0 }
 0x1a4   :  { %s229_s6 = spop %228 }
 0x1a5   :  { %v195_v1 = vstv %s229_s6 }
 0x1a6   :  { %v196_v2 = vmul.f32 0.0625, %v195_v1 }
 0x1a8   :  { %198 = vst.msk [vmem:[#allocation6] sm:$0x1] %vm197_vm8, %v196_v2 }
 0x1a9   :  { %276 = shalt.err (!%p273_p12)
}
 0x1aa   :  { %s277_s11 = scalar_lea.hbm %s367_s3, 16 }
 0x1ab   :  { %p278_p13 = scmp.ne.s32.totalorder %s367_s3, %s277_s11  ;;  %p281_p0 = scmp.lt.u32.totalorder %s277_s11, %s367_s3 }
 0x1ad   :  { %p283_p1 = pnand %p281_p0, %p278_p13 }
 0x1af   :  { %286 = shalt.err (!%p283_p1)
}
 0x1b0   :  { %208 = dma.vmem_to_hbm [thread:$0]  %s206_s5, 16, %s367_s3, [#allocation5]  }
 0x1b1   :  { %289 = dma.done.wait [#allocation5], 16  }
 0x1b2   :  { %290 = vsyncadd [#allocation5], 4294967280 }
 0x1b3   :  { %212 = vsyncpa [#allocation4], 1 }
 0x1b4   :  { %213 = vsyncpa [#allocation5], 1 }

</bundles_post_ra>
